<compile_context>
chip_gen: v6e
topology: v6e:2x2x1
jax: 0.10.0
libtpu: 0.0.40
codegen_flags: <defaults>
</compile_context>

<pallas_src>
import jax
import jax.numpy as jnp
from jax.experimental import pallas as pl
from jax.experimental.pallas import tpu as pltpu


def _rope_kernel(pos_ref, inv_ref, cos_ref, sin_ref):
    """One (1, TS, dim) tile of the RoPE cos/sin tables.

    pos_ref: (1, TS, 1) int32    -- positions, sublane-major
    inv_ref: (1, half) float32   -- inverse frequencies (shared across grid)
    cos_ref / sin_ref: (1, TS, dim) in output dtype
    """
    pos = pos_ref[...].astype(jnp.float32)        # (1, TS, 1)
    inv = inv_ref[...]                            # (1, half)
    # VPU broadcast multiply (deliberately NOT routed through the MXU):
    freqs = pos[0] * inv                          # (TS, 1) * (1, half) -> (TS, half)
    half = freqs.shape[-1]
    # cos/sin on half-width freqs only (half the EUP/VALU work).
    cos_half = jnp.cos(freqs)
    sin_half = jnp.sin(freqs)
    if half % 128 == 0:
        # Lane-aligned halves: four unmasked 128-multiple-wide stores.
        cos_ref[0, :, :half] = cos_half.astype(cos_ref.dtype)
        cos_ref[0, :, half:] = cos_half.astype(cos_ref.dtype)
        sin_ref[0, :, :half] = sin_half.astype(sin_ref.dtype)
        sin_ref[0, :, half:] = sin_half.astype(sin_ref.dtype)
    else:
        # half not a multiple of 128: assemble the full-width tile in-register
        # and do one lane-dense store per table (avoids masked vst.msk).
        cos_ref[0] = jnp.concatenate([cos_half, cos_half], axis=-1).astype(cos_ref.dtype)
        sin_ref[0] = jnp.concatenate([sin_half, sin_half], axis=-1).astype(sin_ref.dtype)


def _pick_seq_tile(S: int, B: int, dim: int, out_dtype) -> int:
    """Sequence-tile size: big enough to amortize per-step overhead, bounded by
    a VMEM budget, and guaranteeing >=2 grid steps when possible (v7x megacore)."""
    itemsize = jnp.dtype(out_dtype).itemsize
    sublane = {4: 8, 2: 16, 1: 32}.get(itemsize, 8)

    def round_up(n: int) -> int:
        return -(-n // sublane) * sublane

    # ~12 MiB budget for the double-buffered cos/sin output slabs keeps the
    # whole pipeline inside every generation's scoped-VMEM default.
    budget = 12 * 1024 * 1024
    per_row = 2 * 2 * dim * itemsize              # 2 outputs x 2 pipeline buffers
    ts = max(sublane, min(2048, (budget // per_row) // sublane * sublane))
    if ts >= S:
        ts = round_up(S)                          # whole row in one step
    # Keep >=2 total grid steps so the pipeline (and v7x's second TensorCore
    # when B == 1) has something to overlap.
    if B * pl.cdiv(S, ts) < 2 and S > sublane:
        ts = max(sublane, round_up(pl.cdiv(S, 2)))
    return ts


def _rope_tables(position_ids, dim: int, base, out_dtype):
    """Builds the [B, S, dim] cos/sin tables with the Pallas kernel."""
    B, S = position_ids.shape
    half = dim // 2

    # Buffer setup (matches nn.Module.__init__): inv_freq[k] = base**(-2k/dim).
    inv_freq = 1.0 / (
        base ** (jnp.arange(0, dim, 2, dtype=jnp.float32) / dim)
    )  # (half,)
    inv_freq_2d = inv_freq.reshape(1, half)

    # (B, S, 1) int32 so the BlockSpec DMA presents positions sublane-major.
    pos_3d = position_ids.astype(jnp.int32).reshape(B, S, 1)

    TS = _pick_seq_tile(S, B, dim, out_dtype)
    n_s_tiles = pl.cdiv(S, TS)                    # ragged last block is masked

    itemsize = jnp.dtype(out_dtype).itemsize
    out_shape = (
        jax.ShapeDtypeStruct((B, S, dim), out_dtype),
        jax.ShapeDtypeStruct((B, S, dim), out_dtype),
    )

    grid_spec = pltpu.PrefetchScalarGridSpec(
        num_scalar_prefetch=0,
        grid=(B, n_s_tiles),
        in_specs=[
            pl.BlockSpec((1, TS, 1), lambda b, s: (b, s, 0)),    # positions tile
            pl.BlockSpec((1, half), lambda b, s: (0, 0)),        # inv_freq (shared)
        ],
        out_specs=[
            pl.BlockSpec((1, TS, dim), lambda b, s: (b, s, 0)),  # cos
            pl.BlockSpec((1, TS, dim), lambda b, s: (b, s, 0)),  # sin
        ],
    )

    cost = pl.CostEstimate(
        flops=B * S * half,
        transcendentals=B * S * dim,
        bytes_accessed=B * S * 4 + half * 4 + 2 * B * S * dim * itemsize,
    )

    # Explicit VMEM headroom (v5e scoped default is 16 MiB; 32 MiB is well
    # under physical VMEM on every generation, including v7x's 64 MiB).
    vmem_limit = 32 * 1024 * 1024

    cos, sin = pl.pallas_call(
        _rope_kernel,
        out_shape=out_shape,
        grid_spec=grid_spec,
        compiler_params=pltpu.CompilerParams(
            dimension_semantics=("parallel", "parallel"),
            vmem_limit_bytes=vmem_limit,
        ),
        cost_estimate=cost,
    )(pos_3d, inv_freq_2d)
    return cos, sin


def gemma_rotary_embedding(x, position_ids, dim: int, base, *,
                           shared_positions: bool = False):
    """Returns (cos, sin), each of shape [B, S, dim], dtype = x.dtype.

    shared_positions=True: caller asserts every batch row has identical
    positions (standard prefill); the table is built once and broadcast,
    cutting HBM writes by B on this write-bound kernel.
    """
    B, S = position_ids.shape
    out_dtype = x.dtype
    if shared_positions and B > 1:
        cos1, sin1 = _rope_tables(position_ids[:1], dim, base, out_dtype)
        return (jnp.broadcast_to(cos1, (B, S, dim)),
                jnp.broadcast_to(sin1, (B, S, dim)))
    return _rope_tables(position_ids, dim, base, out_dtype)


if __name__ == "__main__":
    key = jax.random.PRNGKey(0)
    B, S, dim = 2, 8, 32
    base = 10000
    max_position_embeddings = 2048  # not used in forward, kept for parity

    kx, _ = jax.random.split(key)
    # x only contributes its dtype to the outputs.
    x = jax.random.normal(kx, (B, S, dim), dtype=jnp.float32)
    position_ids = jnp.broadcast_to(jnp.arange(S, dtype=jnp.int32), (B, S))

    # Reference (same math as the PyTorch module, plain JAX).
    inv_freq = 1.0 / (base ** (jnp.arange(0, dim, 2, dtype=jnp.float32) / dim))
    freqs_ref = position_ids.astype(jnp.float32)[:, :, None] * inv_freq[None, None, :]
    emb_ref = jnp.concatenate([freqs_ref, freqs_ref], axis=-1)
    cos_ref = jnp.cos(emb_ref).astype(x.dtype)
    sin_ref = jnp.sin(emb_ref).astype(x.dtype)

    # General path.
    cos, sin = gemma_rotary_embedding(x, position_ids, dim, base)
    cos = jax.block_until_ready(cos)
    sin = jax.block_until_ready(sin)
    assert cos.shape == (B, S, dim) and sin.shape == (B, S, dim)
    assert cos.dtype == x.dtype and sin.dtype == x.dtype
    assert jnp.allclose(cos, cos_ref, atol=1e-5)
    assert jnp.allclose(sin, sin_ref, atol=1e-5)

    # Batch-dedup fast path (positions identical across batch rows here).
    cos_s, sin_s = gemma_rotary_embedding(x, position_ids, dim, base,
                                          shared_positions=True)
    cos_s = jax.block_until_ready(cos_s)
    sin_s = jax.block_until_ready(sin_s)
    assert jnp.allclose(cos_s, cos_ref, atol=1e-5)
    assert jnp.allclose(sin_s, sin_ref, atol=1e-5)

    print("KERNEL_OK")
</pallas_src>

<mosaic_0001>
module attributes {stable_mosaic.version = 11 : i64} {
  func.func @_rope_kernel(%arg0: i32, %arg1: i32, %arg2: memref<1x8x1xi32, #tpu.memory_space<vmem>>, %arg3: memref<1x16xf32, #tpu.memory_space<vmem>>, %arg4: memref<1x8x32xf32, #tpu.memory_space<vmem>>, %arg5: memref<1x8x32xf32, #tpu.memory_space<vmem>>) attributes {dimension_semantics = [#tpu.dimension_semantics<parallel>, #tpu.dimension_semantics<parallel>], iteration_bounds = array<i64: 2, 1>, scalar_prefetch = 0 : i64, scratch_operands = 0 : i64, tpu.core_type = #tpu.core_type<tc>, window_params = [{transform_indices = @transform_0, window_bounds = array<i64: 1, 8, 1>}, {pipeline_mode = #tpu.pipeline_mode<synchronous>, transform_indices = @transform_1, window_bounds = array<i64: 1, 16>}, {transform_indices = @transform_2, window_bounds = array<i64: 1, 8, 32>}, {transform_indices = @transform_3, window_bounds = array<i64: 1, 8, 32>}]} {
    %c0 = arith.constant 0 : index
    %c0_0 = arith.constant 0 : index
    %c0_1 = arith.constant 0 : index
    %0 = vector.load %arg2[%c0, %c0_0, %c0_1] : memref<1x8x1xi32, #tpu.memory_space<vmem>>, vector<1x8x1xi32>
    %1 = arith.sitofp %0 : vector<1x8x1xi32> to vector<1x8x1xf32>
    %c0_2 = arith.constant 0 : index
    %c0_3 = arith.constant 0 : index
    %2 = vector.load %arg3[%c0_2, %c0_3] : memref<1x16xf32, #tpu.memory_space<vmem>>, vector<1x16xf32>
    %3 = vector.shape_cast %1 : vector<1x8x1xf32> to vector<8x1xf32>
    %4 = vector.broadcast %3 : vector<8x1xf32> to vector<8x16xf32>
    %5 = vector.broadcast %2 : vector<1x16xf32> to vector<8x16xf32>
    %6 = arith.mulf %4, %5 : vector<8x16xf32>
    %7 = math.cos %6 : vector<8x16xf32>
    %8 = math.sin %6 : vector<8x16xf32>
    %9 = tpu.concatenate %7, %7 in 1 : vector<8x16xf32>, vector<8x16xf32> -> vector<8x32xf32>
    %c0_4 = arith.constant 0 : index
    %c0_5 = arith.constant 0 : index
    %c0_6 = arith.constant 0 : index
    %10 = vector.load %arg4[%c0_4, %c0_5, %c0_6] : memref<1x8x32xf32, #tpu.memory_space<vmem>>, vector<1x8x32xf32>
    %11 = vector.shape_cast %10 : vector<1x8x32xf32> to vector<8x32xf32>
    %12 = vector.shape_cast %9 : vector<8x32xf32> to vector<1x8x32xf32>
    tpu.vector_store %arg4[%c0_4, %c0_5, %c0_6], %12 {strides = array<i32>} : memref<1x8x32xf32, #tpu.memory_space<vmem>>, vector<1x8x32xf32>,
    %13 = tpu.concatenate %8, %8 in 1 : vector<8x16xf32>, vector<8x16xf32> -> vector<8x32xf32>
    %c0_7 = arith.constant 0 : index
    %c0_8 = arith.constant 0 : index
    %c0_9 = arith.constant 0 : index
    %14 = vector.load %arg5[%c0_7, %c0_8, %c0_9] : memref<1x8x32xf32, #tpu.memory_space<vmem>>, vector<1x8x32xf32>
    %15 = vector.shape_cast %14 : vector<1x8x32xf32> to vector<8x32xf32>
    %16 = vector.shape_cast %13 : vector<8x32xf32> to vector<1x8x32xf32>
    tpu.vector_store %arg5[%c0_7, %c0_8, %c0_9], %16 {strides = array<i32>} : memref<1x8x32xf32, #tpu.memory_space<vmem>>, vector<1x8x32xf32>,
    return
  }
  func.func @transform_0(%arg0: i32, %arg1: i32) -> (i32, i32, i32) {
    %c0_i32 = arith.constant 0 : i32
    %c0_i32_0 = arith.constant 0 : i32
    return %arg0, %arg1, %c0_i32 : i32, i32, i32
  }
  func.func @transform_1(%arg0: i32, %arg1: i32) -> (i32, i32) {
    %c0_i32 = arith.constant 0 : i32
    %c0_i32_0 = arith.constant 0 : i32
    %c0_i32_1 = arith.constant 0 : i32
    return %c0_i32, %c0_i32_0 : i32, i32
  }
  func.func @transform_2(%arg0: i32, %arg1: i32) -> (i32, i32, i32) {
    %c0_i32 = arith.constant 0 : i32
    %c0_i32_0 = arith.constant 0 : i32
    return %arg0, %arg1, %c0_i32 : i32, i32, i32
  }
  func.func @transform_3(%arg0: i32, %arg1: i32) -> (i32, i32, i32) {
    %c0_i32 = arith.constant 0 : i32
    %c0_i32_0 = arith.constant 0 : i32
    return %arg0, %arg1, %c0_i32 : i32, i32, i32
  }
}

</mosaic_0001>

<bundles_post_ra>
// kernel: tpu_custom_call.1
= control target key start
LH: loop header
LB: loop body
LE: loop exit
PB: predicated region body
PF: predicated region fallthrough
CT: control target
= control target key end

     0   :  { %9 = vsyncpa [#allocation3], 0  ;;  %s983_s0 = inlined_call_operand.vmem [shape: s32[2,8,1], index: 0, kind: input, shape index: {}]   ;;  %s984_s1 = inlined_call_operand.vmem [shape: f32[1,16], index: 1, kind: input, shape index: {}]   ;;  %s985_s2 = inlined_call_operand.hbm [shape: f32[2,8,32], index: 2, kind: output, shape index: {0}]   ;;  %s986_s3 = inlined_call_operand.hbm [shape: f32[2,8,32], index: 3, kind: output, shape index: {1}]  }
   0x1   :  { %11 = vsyncpa [#allocation3 + $0x1], 0 }
   0x2   :  { %12 = vsyncpa [#allocation5], 0 }
   0x3   :  { %14 = vsyncpa [#allocation5 + $0x1], 0  ;;  %s816_s12 = smov 0   ;;  %s818_s13 = smov 0  }
   0x4   :  { %s820_s14 = smov 0   ;;  %s822_s15 = smov 0  }
   0x5   :  { %s824_s16 = smov 0   ;;  %s826_s17 = smov 0  }
   0x6 LB: > { %s578_s18 = sadd.s32 4294967295, %s784_s17   ;;  %s579_s19 = sadd.s32 4294967294, %s784_s17   ;;  %s784_s17 = sphi %s826_s17, %s20_s17   ;;  %s780_s16 = sphi %s824_s16, %s993_s16   ;;  %s776_s15 = sphi %s822_s15, %s992_s15   ;;  %s772_s14 = sphi %s820_s14, %s991_s14   ;;  %s768_s13 = sphi %s818_s13, %s990_s13   ;;  %s764_s12 = sphi %s816_s12, %s989_s12  }
   0x7   : > { %s32_s20 = sadd.s32 1, %s780_s16  ;;  %s90_s21 = sadd.s32 1, %s772_s14 }
   0x8   : > { %p34_p0 = scmp.ge.s32.totalorder %s32_s20, 2  ;;  %p100_p1 = scmp.ne.s32.totalorder %s772_s14, %s768_s13 }
   0x9   : > { %p101_p2 = scmp.eq.s32.totalorder %s578_s18, 1  ;;  %p106_p3 = scmp.ne.s32.totalorder %s768_s13, %s764_s12 }
   0xa   : > { %s995_s20 = smov (%p34_p0, %s32_s20), 0  ;;  %p107_p5 = scmp.eq.s32.totalorder %s579_s19, 1 }
   0xb   : > { %p856_p4 = por %p101_p2, %p100_p1  ;;  %s85_s23 = ssub.s32 %s780_s16, %s995_s20 }
   0xc   : > { %p582_p6 = scmp.ge.s32.totalorder %s784_s17, 1  ;;  %p88_p7 = scmp.eq.s32.totalorder %s85_s23, 0 }
   0xd   : > { %p863_p8 = por %p107_p5, %p106_p3  ;;  %p166_p9 = scmp.lt.s32.totalorder %s784_s17, 3 }
   0xe   : > { %s869_s25 = scalar_select %p88_p7, %s772_s14, %s90_s21  }
   0xf   : > { %p167_p10 = pnand %p582_p6, %p166_p9 }
  0x10   : > { %p197_p11 = scmp.lt.s32.totalorder (!%p167_p10), %s776_s15, 1  ;;  %s793_s6 = smov (!%p167_p10), 16  }
  0x11   : > { %170 = sbr.rel (%p167_p10) target bundleno = 388 (0x184), region = 28  ;;  %s901_s7 = sand.u32 (!%p167_p10), 1, %s768_s13  }
  0x12   : > { %s583_s8 = sshll.u32 (!%p167_p10), %s901_s7, 3  ;;  %s597_s9 = sshll.u32 (!%p167_p10), %s776_s15, 7 }
  0x13   : > { %s189_s10 = scalar_lea.vmem (!%p167_p10), [#allocation2], %s583_s8  ;;  %s196_s18 = scalar_lea.vmem (!%p167_p10), [#allocation4], %s583_s8 }
  0x14   : > { %s460_s11 = sshll.u32 (!%p167_p10), %s189_s10, 4  ;;  %s474_s19 = sshll.u32 (!%p167_p10), %s196_s18, 4  ;;  %s910_s11 = int_to_ptr.vmem [resolvable:$true] %s460_s11  ;;  %s917_s19 = int_to_ptr.vmem [resolvable:$true] %s474_s19 }
  0x15   : > { %s915_s28 = scalar_lea.hbm (!%p167_p10), %s986_s3, %s597_s9  ;;  %s441_s29 = scalar_lea.sflag (!%p167_p10), [#allocation3], %s901_s7 }
  0x16   : > { %v786_v0 = vmov 0   ;;  %s198_s26 = scalar_select %p197_p11, %s776_s15, 1  ;;  %v586_v3 = vld [vmem:[%s984_s1] ss:$0 sm:$0xff]  ;;  %v787_v17 = vmov 2102212464  }
  0x17   : > { %673 = vset.pattern.permute.xlu0 %v786_v0  ;;  %v788_v19 = vmov 920167782   ;;  %v789_v23 = vmov 1326507024   ;;  %v790_v25 = vmov 683565275  }
  0x18   : > { %s585_s27 = sshll.u32 %s198_s26, 3  ;;  %v791_v27 = vmov 2475754826   ;;  %v792_v30 = vmov 2131351028   ;;  %s908_s26 = scalar_lea.hbm %s985_s2, %s597_s9 }
  0x19   : > { %s203_s30 = scalar_lea.vmem %s983_s0, %s585_s27  ;;  %s794_s4 = smov [#allocation2]  }
  0x1a   : > { %v204_v1 = vld [vmem:[%s203_s30] sm:$0xff]  ;;  %s678_s30 = scalar_lea.vmem %s910_s11, 128  ;;  %s682_s5 = sshll.u32 %s794_s4, 4  ;;  %s683_s5 = int_to_ptr.vmem [resolvable:$false] %s682_s5 }
  0x1b   : > { %v205_v2 = vcvt.s32.f32 %v204_v1  ;;  %p679_p12 = scmp.ne.s32.totalorder %s910_s11, %s678_s30  ;;  %p685_p1 = scmp.lt.s32.totalorder %s910_s11, %s683_s5 }
  0x1d   : > { %209 = vperm.xlu0 %673, %v205_v2   ;;  %p680_p13 = pnand %p679_p12, %p856_p4 }
  0x1f   : > { %p681_p0 = pneg %p680_p13 }
  0x98   : > { %v210_v4 = vpop.permute.xlu0 %209 }
  0x99   : > { %v879_v5 = vmul.f32 %v586_v3, %v210_v4 }
  0x9b   : > { %v222_v6 = vand.u32 2139095040, %v879_v5  ;;  %v219_v7 = vand.u32 2147483647, %v879_v5  ;;  %vm221_vm7 = vcmp.lt.s32.totalorder %v879_v5, 0  ;;  %vm311_vm15 = vweird.f32 %v879_v5 }
  0x9d   : > { %v223_v8 = vshrl.u32 %v222_v6, 23  ;;  %v226_v10 = vand.u32 8388607, %v219_v7  ;;  %vm220_vm8 = vcmp.le.f32.partialorder %v219_v7, 0.7853982 }
  0x9f   : > { %v587_v9 = vadd.s32 4294967169, %v223_v8  ;;  %v227_v13 = vor.u32 8388608, %v226_v10 }
  0xa1   : > { %v229_v11 = vadd.s32 1, %v587_v9  ;;  %v267_v21 = vshll.u32 %v227_v13, 8 }
  0xa3   : > { %vm230_vm0 = vcmp.gt.s32.totalorder %v229_v11, 0 }
  0xa4   : > { %v231_v12 = vsel %vm230_vm0, %v229_v11, 0  ;;  %vm430_vm0 = vcmask 130048  }
  0xa5   : > { %v233_v14 = vand.u32 31, %v231_v12  ;;  %v232_v15 = vshrl.u32 %v231_v12, 5 }
  0xa7   : > { %v234_v16 = vsub.s32 32, %v233_v14  ;;  %v245_v18 = vshll.u32 %v787_v17, %v233_v14  ;;  %v248_v20 = vshll.u32 %v788_v19, %v233_v14  ;;  %v236_v26 = vshll.u32 %v790_v25, %v233_v14 }
  0xa8   : > { %v239_v29 = vshll.u32 %v791_v27, %v233_v14  ;;  %v242_v32 = vshll.u32 %v792_v30, %v233_v14  ;;  %vm254_vm1 = vcmp.lt.s32.totalorder %v232_v15, 4  ;;  %vm251_vm2 = vcmp.lt.s32.totalorder %v232_v15, 1 }
  0xa9   : > { %v246_v22 = vshrl.u32 %v788_v19, %v234_v16  ;;  %v249_v24 = vshrl.u32 %v789_v23, %v234_v16  ;;  %v237_v28 = vshrl.u32 %v791_v27, %v234_v16  ;;  %v240_v31 = vshrl.u32 %v792_v30, %v234_v16 }
  0xaa   : > { %v243_v33 = vshrl.u32 %v787_v17, %v234_v16  ;;  %v235_v37 = vshrl.u32 %v790_v25, %v234_v16  ;;  %vm252_vm3 = vcmp.lt.s32.totalorder %v232_v15, 2  ;;  %vm253_vm4 = vcmp.lt.s32.totalorder %v232_v15, 3 }
  0xab   : > { %v247_v34 = vor.u32 %v246_v22, %v245_v18  ;;  %v250_v35 = vor.u32 %v249_v24, %v248_v20  ;;  %v238_v36 = vor.u32 %v237_v28, %v236_v26  ;;  %v241_v38 = vor.u32 %v240_v31, %v239_v29 }
  0xac   : > { %v244_v39 = vor.u32 %v243_v33, %v242_v32 }
  0xad   : > { %v260_v40 = vsel %vm254_vm1, %v247_v34, 920167782  ;;  %v264_v41 = vsel %vm254_vm1, %v250_v35, 1326507024  ;;  %v259_v43 = vsel %vm251_vm2, %v238_v36, %v241_v38  ;;  %v255_v46 = vsel %vm251_vm2, %v235_v37, %v238_v36 }
  0xae   : > { %v256_v42 = vsel %vm254_vm1, %v244_v39, 2102212464  ;;  %v261_v44 = vsel %vm253_vm4, %v244_v39, %v260_v40  ;;  %v263_v45 = vsel %vm251_vm2, %v241_v38, %v244_v39  ;;  %v265_v49 = vsel %vm253_vm4, %v247_v34, %v264_v41 }
  0xaf   : > { %v257_v47 = vsel %vm253_vm4, %v241_v38, %v256_v42  ;;  %v262_v48 = vsel %vm252_vm3, %v259_v43, %v261_v44  ;;  %v266_v50 = vsel %vm252_vm3, %v263_v45, %v265_v49  ;;  %vm432_vm1 = vcmask 261120  }
  0xb0   : > { %v885_v51 = vmul.u32.u64.low %v267_v21, %v262_v48  ;;  %v886_v52 = vmul.u32.u64.high %v267_v21, %v262_v48, %v885_v51  ;;  %v888_v53 = vmul.u32.u64.low %v267_v21, %v266_v50  ;;  %v889_v54 = vmul.u32.u64.high %v267_v21, %v266_v50, %v888_v53 }
  0xb1   : > { %v258_v55 = vsel %vm252_vm3, %v255_v46, %v257_v47 }
  0xb2   : > { %v277_v56 = vadd.s32 1, %v886_v52  ;;  %v274_v57 = vmul.u32 %v267_v21, %v258_v55  ;;  %vm276_vm5 = vc.u32 %v889_v54, %v885_v51  ;;  %v275_v6 = vadd.s32 %v885_v51, %v889_v54 }
  0xb4   : > { %v278_v58 = vsel %vm276_vm5, %v277_v56, %v886_v52 }
  0xb5   : > { %v279_v59 = vadd.s32 %v278_v58, %v274_v57 }
  0xb7   : > { %v280_v60 = vadd.s32 536870912, %v279_v59 }
  0xb9   : > { %v281_v61 = vshrl.u32 %v280_v60, 30 }
  0xbb   : > { %v282_v62 = vshll.u32 %v281_v61, 30  ;;  %v305_v20 = vsub.s32 4, %v281_v61 }
  0xbd   : > { %v283_v63 = vsub.s32 %v279_v59, %v282_v62  ;;  %v306_v23 = vsel %vm221_vm7, %v305_v20, %v281_v61 }
  0xbe   : > { %v308_v24 = vsel %vm220_vm8, 0, %v306_v23 }
  0xbf   : > { %v285_v0 = vsub.s32 0, %v283_v63  ;;  %v415_v25 = vadd.s32 3, %v308_v24  ;;  %v312_v27 = vand.u32 3, %v308_v24 }
  0xc1   : > { %v588_v1 = vmin.u32 %v285_v0, %v283_v63  ;;  %v416_v26 = vand.u32 3, %v415_v25  ;;  %vm317_vm10 = vcmp.eq.s32.totalorder %v312_v27, 2  ;;  %vm314_vm12 = vcmp.eq.s32.totalorder %v312_v27, 0 }
  0xc2   : > { %vm313_vm14 = vcmp.lt.s32.totalorder %v312_v27, 2 }
  0xc3   : > { %v287_v2 = vclz %v588_v1  ;;  %vm421_vm9 = vcmp.eq.s32.totalorder %v416_v26, 2  ;;  %vm418_vm11 = vcmp.eq.s32.totalorder %v416_v26, 0  ;;  %vm417_vm13 = vcmp.lt.s32.totalorder %v416_v26, 2 }
  0xc5   : > { %v589_v3 = vadd.s32 4294967294, %v287_v2 }
  0xc7   : > { %vm590_vm6 = vcmp.lt.s32.totalorder %v589_v3, 0 }
  0xc8   : > { %v290_v4 = vsel %vm590_vm6, 0, %v589_v3 }
  0xc9   : > { %v291_v8 = vsub.s32 32, %v290_v4  ;;  %v295_v9 = vsub.s32 4294967266, %v290_v4  ;;  %v292_v10 = vshll.u32 %v283_v63, %v290_v4 }
  0xcb   : > { %v293_v11 = vshrl.u32 %v275_v6, %v291_v8  ;;  %v296_v12 = vadd.s32 127, %v295_v9 }
  0xcd   : > { %v294_v13 = vor.u32 %v293_v11, %v292_v10  ;;  %v297_v14 = vshll.u32 %v296_v12, 23 }
  0xcf   : > { %v298_v15 = vor.u32 4788187, %v297_v14  ;;  %v301_v17 = vcvt.s32.f32 %v294_v13 }
  0xd1   : > { %v299_v16 = vand.u32 2147483647, %v298_v15 }
  0xd3   : > { %v302_v18 = vmul.f32 %v301_v17, %v299_v16 }
  0xd5   : > { %v303_v19 = vxor.u32 2147483648, %v302_v18 }
  0xd7   : > { %v304_v21 = vsel %vm221_vm7, %v303_v19, %v302_v18 }
  0xd8   : > { %v307_v22 = vsel %vm220_vm8, %v879_v5, %v304_v21 }
  0xd9   : > { %674 = vcosq.f32 %v307_v22 }
  0xda   : > { %676 = vsinq.f32 %v307_v22 }
  0xe6   : > { %v675_v28 = vpop.eup %674 }
  0xe7   : > { %v677_v29 = vpop.eup %676  ;;  %v318_v30 = vxor.u32 2147483648, %v675_v28 }
  0xe8   : > { %v315_v31 = vxor.u32 2147483648, %v677_v29 }
  0xe9   : > { %v423_v32 = vsel %vm421_vm9, %v318_v30, %v677_v29  ;;  %v319_v7 = vsel %vm317_vm10, %v318_v30, %v677_v29 }
  0xea   : > { %v420_v33 = vsel %vm418_vm11, %v675_v28, %v315_v31  ;;  %v316_v34 = vsel %vm314_vm12, %v675_v28, %v315_v31 }
  0xeb   : > { %v424_v35 = vsel %vm417_vm13, %v420_v33, %v423_v32  ;;  %v320_v36 = vsel %vm313_vm14, %v316_v34, %v319_v7 }
  0xec   : > { %v425_v37 = vsel %vm311_vm15, nan, %v424_v35  ;;  %v321_v38 = vsel %vm311_vm15, nan, %v320_v36 }
  0xed   : > { %435 = vrot.lane.b32.xlu1 %v425_v37, %s793_s6  ;;  %427 = vrot.lane.b32.xlu0 %v321_v38, %s793_s6  ;;  %s684_s6 = scalar_lea.vmem %s683_s5, 256 }
  0xee   : > { %p686_p2 = scmp.lt.s32.totalorder %s684_s6, %s678_s30 }
  0xf0   : > { %p687_p3 = por %p686_p2, %p685_p1 }
  0xf2   : > { %p688_p5 = pnand %p687_p3, %p681_p0 }
 0x15f   : > { %v436_v5 = vpop.permute.xlu1 %435  ;;  %v428_v39 = vpop.permute.xlu0 %427 }
 0x160   : > { %v438_v40 = vsel %vm430_vm0, %v425_v37, %v436_v5  ;;  %v431_v41 = vsel %vm430_vm0, %v321_v38, %v428_v39 }
 0x161   : > { %433 = vst.msk [vmem:[%s189_s10] sm:$0xff] %vm432_vm1, %v431_v41  ;;  %439 = vst.msk [vmem:[%s196_s18] sm:$0xff] %vm432_vm1, %v438_v40 }
 0x162   : > { %691 = shalt.err (!%p688_p5)
}
 0x163   : > { %s692_s8 = scalar_lea.hbm %s908_s26, 128  ;;  %s696_s18 = scalar_lea.hbm %s985_s2, 256 }
 0x164   : > { %p693_p6 = scmp.ne.s32.totalorder %s908_s26, %s692_s8  ;;  %p697_p10 = scmp.lt.s32.totalorder %s908_s26, %s985_s2 }
 0x165   : > { %p698_p11 = scmp.lt.s32.totalorder %s696_s18, %s692_s8 }
 0x166   : > { %p694_p7 = pnand %p693_p6, %p856_p4 }
 0x167   : > { %p699_p12 = por %p698_p11, %p697_p10 }
 0x168   : > { %p695_p9 = pneg %p694_p7 }
 0x16a   : > { %p700_p13 = pnand %p699_p12, %p695_p9 }
 0x16c   : > { %703 = shalt.err (!%p700_p13)
}
 0x16d   : > { %605 = dma.vmem_to_hbm [thread:$0]  (%p856_p4), %s910_s11, 128, %s908_s26, %s441_s29  }
 0x16e   : > { %s446_s15 = scalar_lea.sflag [#allocation5], %s901_s7  ;;  %s704_s27 = scalar_lea.vmem %s917_s19, 128 }
 0x16f   : > { %p705_p0 = scmp.ne.s32.totalorder %s917_s19, %s704_s27  ;;  %s795_s30 = smov [#allocation4]  }
 0x170   : > { %s708_s4 = sshll.u32 %s795_s30, 4  ;;  %s709_s4 = int_to_ptr.vmem [resolvable:$false] %s708_s4 }
 0x171   : > { %p706_p1 = pnand %p705_p0, %p856_p4  ;;  %s710_s5 = scalar_lea.vmem %s709_s4, 256 }
 0x172   : > { %p711_p3 = scmp.lt.s32.totalorder %s917_s19, %s709_s4  ;;  %p712_p5 = scmp.lt.s32.totalorder %s710_s5, %s704_s27 }
 0x173   : > { %p707_p2 = pneg %p706_p1 }
 0x174   : > { %p713_p6 = por %p712_p5, %p711_p3 }
 0x176   : > { %p714_p7 = pnand %p713_p6, %p707_p2 }
 0x178   : > { %717 = shalt.err (!%p714_p7)
}
 0x179   : > { %s718_s11 = scalar_lea.hbm %s915_s28, 128  ;;  %s722_s29 = scalar_lea.hbm %s986_s3, 256 }
 0x17a   : > { %p719_p9 = scmp.ne.s32.totalorder %s915_s28, %s718_s11  ;;  %p723_p12 = scmp.lt.s32.totalorder %s915_s28, %s986_s3 }
 0x17b   : > { %p724_p13 = scmp.lt.s32.totalorder %s722_s29, %s718_s11 }
 0x17c   : > { %p720_p10 = pnand %p719_p9, %p856_p4 }
 0x17d   : > { %p725_p0 = por %p724_p13, %p723_p12 }
 0x17e   : > { %p721_p11 = pneg %p720_p10 }
 0x180   : > { %p726_p1 = pnand %p725_p0, %p721_p11 }
 0x182   : > { %729 = shalt.err (!%p726_p1)
}
 0x183   : > { %606 = dma.vmem_to_hbm [thread:$0]  (%p856_p4), %s917_s19, 128, %s915_s28, %s446_s15  }
 0x184 PF: > { %p616_p2 = scmp.ge.s32.totalorder %s784_s17, 2  ;;  %s486_s9 = sand.u32 1, %s764_s12  }
 0x185   : > { %s487_s10 = scalar_lea.sflag [#allocation3], %s486_s9 }
 0x186   : > { %p610_p3 = pnand %p616_p2, %p863_p8 }
 0x188   : > { %p611_p5 = pneg %p610_p3 }
 0x18a   : > { %755 = dma.done.wait (%p611_p5), %s487_s10, 128  }
 0x18b   : > { %757 = vsyncadd (%p611_p5), %s487_s10, 4294967168  ;;  %s496_s18 = scalar_lea.sflag [#allocation5], %s486_s9 }
 0x18c   : > { %759 = dma.done.wait (%p611_p5), %s496_s18, 128  }
 0x18d   : > { %761 = vsyncadd (%p611_p5), %s496_s18, 4294967168  ;;  %s20_s17 = sadd.s32 1, %s784_s17   ;;  %s989_s12 = smov %s768_s13 }
 0x18e   : > { %p17_p6 = scmp.ge.s32.totalorder %s20_s17, 4   ;;  %s990_s13 = smov %s772_s14 }
 0x18f   : > { %s991_s14 = smov %s869_s25  ;;  %s992_s15 = smov %s780_s16 }
 0x190   : > { %s993_s16 = smov %s995_s20  ;;  %19 = sbr.rel (!%p17_p6) target bundleno = 6 (0x6), region = 80 }
 0x195   :  { %501 = vsyncpa [#allocation3], 1 }
 0x196   :  { %503 = vsyncpa [#allocation3 + $0x1], 1 }
 0x197   :  { %504 = vsyncpa [#allocation5], 1 }
 0x198   :  { %506 = vsyncpa [#allocation5 + $0x1], 1 }

</bundles_post_ra>
